<compile_context>
chip_gen: v6e
topology: v6e:2x2x1
jax: 0.10.0
libtpu: 0.0.40
codegen_flags: <defaults>
</compile_context>

<pallas_src>
import functools

import jax
import jax.numpy as jnp
from jax import lax
from jax.experimental import pallas as pl
from jax.experimental.pallas import tpu as pltpu


NEG_SLOPE = 0.01  # F.leaky_relu default negative_slope


def _leaky_relu_dropout(z, bits, threshold, scale):
    """leaky_relu + inverted dropout, folded into two selects + one mul.

    `bits` are raw uint32 randoms; an element is dropped iff bits < threshold,
    where threshold = round(p * 2**32).  Kept elements are scaled by 1/(1-p).
    """
    act = jnp.where(z > 0, z, NEG_SLOPE * z)
    keep = bits >= jnp.uint32(threshold)
    return jnp.where(keep, act * scale, 0.0)


def _gnn_kernel(adj_ref, x_ref, w1_ref, b1_ref, w2_ref, b2_ref, wl_ref, bl_ref,
                bits1_ref, bits2_ref, out_ref, *,
                threshold, scale, adj_first_1, adj_first_2):
    adj = adj_ref[...]                                  # (N, N)   bf16 normalized Â
    x = x_ref[...]                                      # (N, Fin) bf16

    # --- GCNConv 1: Â X W1 + b1 (do the NxN matmul against the smaller width) ---
    if adj_first_1:                                     # Fin <= hidden: (Â X) W1
        z = jnp.dot(adj, x, preferred_element_type=jnp.float32)
        z = jnp.dot(z.astype(jnp.bfloat16), w1_ref[...],
                    preferred_element_type=jnp.float32)
    else:                                               # hidden < Fin: Â (X W1)
        z = jnp.dot(x, w1_ref[...], preferred_element_type=jnp.float32)
        z = jnp.dot(adj, z.astype(jnp.bfloat16),
                    preferred_element_type=jnp.float32)
    z = z + b1_ref[...]                                 # f32 (N, H)
    h = _leaky_relu_dropout(z, bits1_ref[0], threshold, scale)

    # --- GCNConv 2: Â H W2 + b2 ---
    hb = h.astype(jnp.bfloat16)
    if adj_first_2:                                     # hidden <= emb: (Â H) W2
        z = jnp.dot(adj, hb, preferred_element_type=jnp.float32)
        z = jnp.dot(z.astype(jnp.bfloat16), w2_ref[...],
                    preferred_element_type=jnp.float32)
    else:                                               # emb < hidden: Â (H W2)
        z = jnp.dot(hb, w2_ref[...], preferred_element_type=jnp.float32)
        z = jnp.dot(adj, z.astype(jnp.bfloat16),
                    preferred_element_type=jnp.float32)
    z = z + b2_ref[...]                                 # f32 (N, E)
    h = _leaky_relu_dropout(z, bits2_ref[0], threshold, scale)

    # --- Linear(E -> 1), written lane-dense as a (1, N) row ---
    out_row = lax.dot_general(
        wl_ref[...], h.astype(jnp.bfloat16),            # (1,E) x (N,E), contract E
        dimension_numbers=(((1,), (1,)), ((), ())),
        preferred_element_type=jnp.float32) + bl_ref[...]
    out_ref[0] = out_row                                # out_ref block is (1, 1, N)


def build_normalized_adjacency(edge_index, num_nodes):
    """Dense Â = D^-1/2 (A + I) D^-1/2.  Static per graph: build once and reuse."""
    src, dst = edge_index[0], edge_index[1]
    adj = jnp.zeros((num_nodes, num_nodes), jnp.float32).at[dst, src].set(1.0)
    # add_remaining_self_loops semantics: self-loop weight is exactly 1 even if
    # edge_index already contains self-loops (and duplicate edges are deduped).
    adj = jnp.maximum(adj, jnp.eye(num_nodes, dtype=jnp.float32))
    deg = adj.sum(axis=1)
    d_inv_sqrt = jnp.where(deg > 0, lax.rsqrt(deg), 0.0)
    return (d_inv_sqrt[:, None] * adj) * d_inv_sqrt[None, :]


def gnn_forward_mc(x, adj_norm, params, *, dropout_rate, key, num_samples):
    """Batched MC-dropout forward: returns (num_samples, N)."""
    n, f_in = x.shape
    w1, b1, w2, b2, wl, bl = params
    hidden = w1.shape[1]
    emb = w2.shape[1]
    s = int(num_samples)

    # Per-sample dropout randomness (uint32 raw bits), generated with the
    # portable JAX PRNG so the kernel has no TPU-only prng primitives.
    k1, k2 = jax.random.split(key)
    bits1 = jax.random.bits(k1, (s, n, hidden), dtype=jnp.uint32)
    bits2 = jax.random.bits(k2, (s, n, emb), dtype=jnp.uint32)

    p = float(dropout_rate)
    threshold = min(int(round(p * 2.0 ** 32)), 2 ** 32 - 1)
    scale = 1.0 / (1.0 - p) if p < 1.0 else 0.0

    kernel = functools.partial(
        _gnn_kernel,
        threshold=threshold,
        scale=scale,
        adj_first_1=(f_in <= hidden),
        adj_first_2=(hidden <= emb),
    )

    # bf16 MXU inputs, f32 accumulation; biases stay f32.
    adj_bf = adj_norm.astype(jnp.bfloat16)
    x_bf = x.astype(jnp.bfloat16)
    w1_bf = w1.astype(jnp.bfloat16)
    w2_bf = w2.astype(jnp.bfloat16)
    wl_bf = wl.reshape(1, emb).astype(jnp.bfloat16)
    b1_f = b1.reshape(1, hidden).astype(jnp.float32)
    b2_f = b2.reshape(1, emb).astype(jnp.float32)
    bl_f = bl.reshape(1, 1).astype(jnp.float32)

    def resident(arr):
        zeros = (0,) * arr.ndim
        return pl.BlockSpec(arr.shape, lambda i: zeros)

    out = pl.pallas_call(
        kernel,
        grid=(s,),
        in_specs=[
            resident(adj_bf), resident(x_bf),
            resident(w1_bf), resident(b1_f),
            resident(w2_bf), resident(b2_f),
            resident(wl_bf), resident(bl_f),
            pl.BlockSpec((1, n, hidden), lambda i: (i, 0, 0)),
            pl.BlockSpec((1, n, emb), lambda i: (i, 0, 0)),
        ],
        out_specs=pl.BlockSpec((1, 1, n), lambda i: (i, 0, 0)),
        out_shape=jax.ShapeDtypeStruct((s, 1, n), jnp.float32),
        compiler_params=pltpu.CompilerParams(
            dimension_semantics=("parallel",)),   # samples shard across TCs on v7x
    )(adj_bf, x_bf, w1_bf, b1_f, w2_bf, b2_f, wl_bf, bl_f, bits1, bits2)

    return out.reshape(s, n)


def gnn_forward(x, adj_norm, params, *, dropout_rate, key):
    """Single forward pass matching GNNModel.forward: returns (N,)."""
    return gnn_forward_mc(x, adj_norm, params, dropout_rate=dropout_rate,
                          key=key, num_samples=1)[0]


def init_params(key, input_dims, hidden_size, embedding_dims):
    """Deterministic synthetic parameters matching the module's shapes."""
    k1, k2, k3 = jax.random.split(key, 3)
    w1 = jax.random.normal(k1, (input_dims, hidden_size), jnp.float32) / jnp.sqrt(input_dims)
    b1 = jnp.zeros((hidden_size,), jnp.float32)
    w2 = jax.random.normal(k2, (hidden_size, embedding_dims), jnp.float32) / jnp.sqrt(hidden_size)
    b2 = jnp.zeros((embedding_dims,), jnp.float32)
    wl = jax.random.normal(k3, (embedding_dims, 1), jnp.float32) / jnp.sqrt(embedding_dims)
    bl = jnp.zeros((1,), jnp.float32)
    return (w1, b1, w2, b2, wl, bl)


if __name__ == "__main__":
    # Small shapes implied by the module: N nodes, input feature dims from the
    # workload, hidden_size, embedding_dims.
    N = 16
    INPUT_DIMS = 8        # stands in for utils.get_feature_number(workload)
    HIDDEN = 32
    EMB = 16
    DROPOUT_RATE = 0.1

    root = jax.random.PRNGKey(0)
    kx, kp, kd, kmc = jax.random.split(root, 4)

    x = jax.random.normal(kx, (N, INPUT_DIMS), jnp.float32)

    # Deterministic small graph: bidirectional ring.
    src = jnp.arange(N, dtype=jnp.int32)
    dst = (src + 1) % N
    edge_index = jnp.concatenate(
        [jnp.stack([src, dst], axis=0), jnp.stack([dst, src], axis=0)], axis=1
    )  # (2, 2N)

    params = init_params(kp, INPUT_DIMS, HIDDEN, EMB)

    # Â is static per graph: build once, reuse for every forward sample.
    adj_norm = build_normalized_adjacency(edge_index, N)

    # Single forward pass (module semantics): (N,)
    out = gnn_forward(x, adj_norm, params, dropout_rate=DROPOUT_RATE, key=kd)
    out = jax.block_until_ready(out)
    assert out.shape == (N,), out.shape

    # Batched MC-dropout samples in one launch: (S, N)
    out_mc = gnn_forward_mc(x, adj_norm, params, dropout_rate=DROPOUT_RATE,
                            key=kmc, num_samples=4)
    out_mc = jax.block_until_ready(out_mc)
    assert out_mc.shape == (4, N), out_mc.shape

    print("KERNEL_OK")
</pallas_src>

<mosaic_0001>
module attributes {stable_mosaic.version = 11 : i64} {
  func.func @_gnn_kernel(%arg0: i32, %arg1: memref<16x16xbf16, #tpu.memory_space<vmem>>, %arg2: memref<16x8xbf16, #tpu.memory_space<vmem>>, %arg3: memref<8x32xbf16, #tpu.memory_space<vmem>>, %arg4: memref<1x32xf32, #tpu.memory_space<vmem>>, %arg5: memref<32x16xbf16, #tpu.memory_space<vmem>>, %arg6: memref<1x16xf32, #tpu.memory_space<vmem>>, %arg7: memref<1x16xbf16, #tpu.memory_space<vmem>>, %arg8: memref<1x1xf32, #tpu.memory_space<vmem>>, %arg9: memref<1x16x32xi32, #tpu.memory_space<vmem>>, %arg10: memref<1x16x16xi32, #tpu.memory_space<vmem>>, %arg11: memref<1x1x16xf32, #tpu.memory_space<vmem>>) attributes {dimension_semantics = [#tpu.dimension_semantics<parallel>], iteration_bounds = array<i64: 1>, scalar_prefetch = 0 : i64, scratch_operands = 0 : i64, tpu.core_type = #tpu.core_type<tc>, window_params = [{pipeline_mode = #tpu.pipeline_mode<synchronous>, transform_indices = @transform_0, window_bounds = array<i64: 16, 16>}, {pipeline_mode = #tpu.pipeline_mode<synchronous>, transform_indices = @transform_1, window_bounds = array<i64: 16, 8>}, {pipeline_mode = #tpu.pipeline_mode<synchronous>, transform_indices = @transform_2, window_bounds = array<i64: 8, 32>}, {pipeline_mode = #tpu.pipeline_mode<synchronous>, transform_indices = @transform_3, window_bounds = array<i64: 1, 32>}, {pipeline_mode = #tpu.pipeline_mode<synchronous>, transform_indices = @transform_4, window_bounds = array<i64: 32, 16>}, {pipeline_mode = #tpu.pipeline_mode<synchronous>, transform_indices = @transform_5, window_bounds = array<i64: 1, 16>}, {pipeline_mode = #tpu.pipeline_mode<synchronous>, transform_indices = @transform_6, window_bounds = array<i64: 1, 16>}, {pipeline_mode = #tpu.pipeline_mode<synchronous>, transform_indices = @transform_7, window_bounds = array<i64: 1, 1>}, {transform_indices = @transform_8, window_bounds = array<i64: 1, 16, 32>}, {transform_indices = @transform_9, window_bounds = array<i64: 1, 16, 16>}, {transform_indices = @transform_10, window_bounds = array<i64: 1, 1, 16>}]} {
    %c0 = arith.constant 0 : index
    %c0_0 = arith.constant 0 : index
    %0 = vector.load %arg1[%c0, %c0_0] : memref<16x16xbf16, #tpu.memory_space<vmem>>, vector<16x16xbf16>
    %c0_1 = arith.constant 0 : index
    %c0_2 = arith.constant 0 : index
    %1 = vector.load %arg2[%c0_1, %c0_2] : memref<16x8xbf16, #tpu.memory_space<vmem>>, vector<16x8xbf16>
    %cst = arith.constant dense<0.000000e+00> : vector<16x8xf32>
    %2 = tpu.matmul %0, %1, %cst {dimension_numbers = #tpu.dot_dimension_numbers<[1], [0], [0], [1], [0, 0, 1, 1], [], []>} : vector<16x16xbf16>, vector<16x8xbf16>, vector<16x8xf32> -> vector<16x8xf32>
    %3 = arith.truncf %2 : vector<16x8xf32> to vector<16x8xbf16>
    %c0_3 = arith.constant 0 : index
    %c0_4 = arith.constant 0 : index
    %4 = vector.load %arg3[%c0_3, %c0_4] : memref<8x32xbf16, #tpu.memory_space<vmem>>, vector<8x32xbf16>
    %cst_5 = arith.constant dense<0.000000e+00> : vector<16x32xf32>
    %5 = tpu.matmul %3, %4, %cst_5 {dimension_numbers = #tpu.dot_dimension_numbers<[1], [0], [0], [1], [0, 0, 1, 1], [], []>} : vector<16x8xbf16>, vector<8x32xbf16>, vector<16x32xf32> -> vector<16x32xf32>
    %c0_6 = arith.constant 0 : index
    %c0_7 = arith.constant 0 : index
    %6 = vector.load %arg4[%c0_6, %c0_7] : memref<1x32xf32, #tpu.memory_space<vmem>>, vector<1x32xf32>
    %7 = vector.broadcast %6 : vector<1x32xf32> to vector<16x32xf32>
    %8 = arith.addf %5, %7 : vector<16x32xf32>
    %c0_8 = arith.constant 0 : index
    %c0_9 = arith.constant 0 : index
    %c0_10 = arith.constant 0 : index
    %9 = vector.load %arg9[%c0_8, %c0_9, %c0_10] : memref<1x16x32xi32, #tpu.memory_space<vmem>>, vector<1x16x32xi32>
    %10 = vector.shape_cast %9 : vector<1x16x32xi32> to vector<16x32xi32>
    %cst_11 = arith.constant 0.000000e+00 : f32
    %11 = vector.broadcast %cst_11 : f32 to vector<16x32xf32>
    %12 = arith.cmpf ogt, %8, %11 : vector<16x32xf32>
    %cst_12 = arith.constant 0.00999999977 : f32
    %13 = vector.broadcast %cst_12 : f32 to vector<16x32xf32>
    %14 = arith.mulf %13, %8 : vector<16x32xf32>
    %15 = arith.select %12, %8, %14 : vector<16x32xi1>, vector<16x32xf32>
    %c429496730_i32 = arith.constant 429496730 : i32
    %16 = vector.broadcast %c429496730_i32 : i32 to vector<16x32xi32>
    %17 = arith.cmpi uge, %10, %16 : vector<16x32xi32>
    %cst_13 = arith.constant 1.11111116 : f32
    %18 = vector.broadcast %cst_13 : f32 to vector<16x32xf32>
    %19 = arith.mulf %15, %18 : vector<16x32xf32>
    %cst_14 = arith.constant 0.000000e+00 : f32
    %20 = vector.broadcast %cst_14 : f32 to vector<16x32xf32>
    %21 = arith.select %17, %19, %20 : vector<16x32xi1>, vector<16x32xf32>
    %22 = arith.truncf %21 : vector<16x32xf32> to vector<16x32xbf16>
    %c0_15 = arith.constant 0 : index
    %c0_16 = arith.constant 0 : index
    %23 = vector.load %arg5[%c0_15, %c0_16] : memref<32x16xbf16, #tpu.memory_space<vmem>>, vector<32x16xbf16>
    %cst_17 = arith.constant dense<0.000000e+00> : vector<16x16xf32>
    %24 = tpu.matmul %22, %23, %cst_17 {dimension_numbers = #tpu.dot_dimension_numbers<[1], [0], [0], [1], [0, 0, 1, 1], [], []>} : vector<16x32xbf16>, vector<32x16xbf16>, vector<16x16xf32> -> vector<16x16xf32>
    %25 = arith.truncf %24 : vector<16x16xf32> to vector<16x16xbf16>
    %cst_18 = arith.constant dense<0.000000e+00> : vector<16x16xf32>
    %26 = tpu.matmul %0, %25, %cst_18 {dimension_numbers = #tpu.dot_dimension_numbers<[1], [0], [0], [1], [0, 0, 1, 1], [], []>} : vector<16x16xbf16>, vector<16x16xbf16>, vector<16x16xf32> -> vector<16x16xf32>
    %c0_19 = arith.constant 0 : index
    %c0_20 = arith.constant 0 : index
    %27 = vector.load %arg6[%c0_19, %c0_20] : memref<1x16xf32, #tpu.memory_space<vmem>>, vector<1x16xf32>
    %28 = vector.broadcast %27 : vector<1x16xf32> to vector<16x16xf32>
    %29 = arith.addf %26, %28 : vector<16x16xf32>
    %c0_21 = arith.constant 0 : index
    %c0_22 = arith.constant 0 : index
    %c0_23 = arith.constant 0 : index
    %30 = vector.load %arg10[%c0_21, %c0_22, %c0_23] : memref<1x16x16xi32, #tpu.memory_space<vmem>>, vector<1x16x16xi32>
    %31 = vector.shape_cast %30 : vector<1x16x16xi32> to vector<16x16xi32>
    %cst_24 = arith.constant 0.000000e+00 : f32
    %32 = vector.broadcast %cst_24 : f32 to vector<16x16xf32>
    %33 = arith.cmpf ogt, %29, %32 : vector<16x16xf32>
    %cst_25 = arith.constant 0.00999999977 : f32
    %34 = vector.broadcast %cst_25 : f32 to vector<16x16xf32>
    %35 = arith.mulf %34, %29 : vector<16x16xf32>
    %36 = arith.select %33, %29, %35 : vector<16x16xi1>, vector<16x16xf32>
    %c429496730_i32_26 = arith.constant 429496730 : i32
    %37 = vector.broadcast %c429496730_i32_26 : i32 to vector<16x16xi32>
    %38 = arith.cmpi uge, %31, %37 : vector<16x16xi32>
    %cst_27 = arith.constant 1.11111116 : f32
    %39 = vector.broadcast %cst_27 : f32 to vector<16x16xf32>
    %40 = arith.mulf %36, %39 : vector<16x16xf32>
    %cst_28 = arith.constant 0.000000e+00 : f32
    %41 = vector.broadcast %cst_28 : f32 to vector<16x16xf32>
    %42 = arith.select %38, %40, %41 : vector<16x16xi1>, vector<16x16xf32>
    %c0_29 = arith.constant 0 : index
    %c0_30 = arith.constant 0 : index
    %43 = vector.load %arg7[%c0_29, %c0_30] : memref<1x16xbf16, #tpu.memory_space<vmem>>, vector<1x16xbf16>
    %44 = arith.truncf %42 : vector<16x16xf32> to vector<16x16xbf16>
    %cst_31 = arith.constant dense<0.000000e+00> : vector<1x16xf32>
    %45 = tpu.matmul %43, %44, %cst_31 {dimension_numbers = #tpu.dot_dimension_numbers<[1], [1], [0], [0], [0, 0, 1, 0], [], []>} : vector<1x16xbf16>, vector<16x16xbf16>, vector<1x16xf32> -> vector<1x16xf32>
    %c0_32 = arith.constant 0 : index
    %c0_33 = arith.constant 0 : index
    %46 = vector.load %arg8[%c0_32, %c0_33] : memref<1x1xf32, #tpu.memory_space<vmem>>, vector<1x1xf32>
    %47 = vector.broadcast %46 : vector<1x1xf32> to vector<1x16xf32>
    %48 = arith.addf %45, %47 : vector<1x16xf32>
    %c0_34 = arith.constant 0 : index
    %c0_35 = arith.constant 0 : index
    %c0_36 = arith.constant 0 : index
    %49 = vector.load %arg11[%c0_34, %c0_35, %c0_36] : memref<1x1x16xf32, #tpu.memory_space<vmem>>, vector<1x1x16xf32>
    %50 = vector.shape_cast %49 : vector<1x1x16xf32> to vector<1x16xf32>
    %51 = vector.shape_cast %48 : vector<1x16xf32> to vector<1x1x16xf32>
    tpu.vector_store %arg11[%c0_34, %c0_35, %c0_36], %51 {strides = array<i32>} : memref<1x1x16xf32, #tpu.memory_space<vmem>>, vector<1x1x16xf32>,
    return
  }
  func.func @transform_0(%arg0: i32) -> (i32, i32) {
    %c0_i32 = arith.constant 0 : i32
    %c0_i32_0 = arith.constant 0 : i32
    %c0_i32_1 = arith.constant 0 : i32
    return %c0_i32, %c0_i32_0 : i32, i32
  }
  func.func @transform_1(%arg0: i32) -> (i32, i32) {
    %c0_i32 = arith.constant 0 : i32
    %c0_i32_0 = arith.constant 0 : i32
    %c0_i32_1 = arith.constant 0 : i32
    return %c0_i32, %c0_i32_0 : i32, i32
  }
  func.func @transform_2(%arg0: i32) -> (i32, i32) {
    %c0_i32 = arith.constant 0 : i32
    %c0_i32_0 = arith.constant 0 : i32
    %c0_i32_1 = arith.constant 0 : i32
    return %c0_i32, %c0_i32_0 : i32, i32
  }
  func.func @transform_3(%arg0: i32) -> (i32, i32) {
    %c0_i32 = arith.constant 0 : i32
    %c0_i32_0 = arith.constant 0 : i32
    %c0_i32_1 = arith.constant 0 : i32
    return %c0_i32, %c0_i32_0 : i32, i32
  }
  func.func @transform_4(%arg0: i32) -> (i32, i32) {
    %c0_i32 = arith.constant 0 : i32
    %c0_i32_0 = arith.constant 0 : i32
    %c0_i32_1 = arith.constant 0 : i32
    return %c0_i32, %c0_i32_0 : i32, i32
  }
  func.func @transform_5(%arg0: i32) -> (i32, i32) {
    %c0_i32 = arith.constant 0 : i32
    %c0_i32_0 = arith.constant 0 : i32
    %c0_i32_1 = arith.constant 0 : i32
    return %c0_i32, %c0_i32_0 : i32, i32
  }
  func.func @transform_6(%arg0: i32) -> (i32, i32) {
    %c0_i32 = arith.constant 0 : i32
    %c0_i32_0 = arith.constant 0 : i32
    %c0_i32_1 = arith.constant 0 : i32
    return %c0_i32, %c0_i32_0 : i32, i32
  }
  func.func @transform_7(%arg0: i32) -> (i32, i32) {
    %c0_i32 = arith.constant 0 : i32
    %c0_i32_0 = arith.constant 0 : i32
    %c0_i32_1 = arith.constant 0 : i32
    return %c0_i32, %c0_i32_0 : i32, i32
  }
  func.func @transform_8(%arg0: i32) -> (i32, i32, i32) {
    %c0_i32 = arith.constant 0 : i32
    %c0_i32_0 = arith.constant 0 : i32
    %c0_i32_1 = arith.constant 0 : i32
    return %arg0, %c0_i32, %c0_i32_0 : i32, i32, i32
  }
  func.func @transform_9(%arg0: i32) -> (i32, i32, i32) {
    %c0_i32 = arith.constant 0 : i32
    %c0_i32_0 = arith.constant 0 : i32
    %c0_i32_1 = arith.constant 0 : i32
    return %arg0, %c0_i32, %c0_i32_0 : i32, i32, i32
  }
  func.func @transform_10(%arg0: i32) -> (i32, i32, i32) {
    %c0_i32 = arith.constant 0 : i32
    %c0_i32_0 = arith.constant 0 : i32
    %c0_i32_1 = arith.constant 0 : i32
    return %arg0, %c0_i32, %c0_i32_0 : i32, i32, i32
  }
}

</mosaic_0001>

<bundles_post_ra>
// kernel: tpu_custom_call.1
= control target key start
LH: loop header
LB: loop body
LE: loop exit
PB: predicated region body
PF: predicated region fallthrough
CT: control target
= control target key end

     0   :  { %s645_s0 = inlined_call_operand.hbm [shape: bf16[16,16], index: 0, kind: input, shape index: {}]   ;;  %s646_s1 = inlined_call_operand.vmem [shape: bf16[16,8], index: 1, kind: input, shape index: {}]   ;;  %s647_s2 = inlined_call_operand.hbm [shape: bf16[8,32], index: 2, kind: input, shape index: {}]   ;;  %s648_s3 = inlined_call_operand.vmem [shape: f32[1,32], index: 3, kind: input, shape index: {}]   ;;  %s649_s4 = inlined_call_operand.vmem [shape: bf16[32,16], index: 4, kind: input, shape index: {}]   ;;  %s650_s5 = inlined_call_operand.vmem [shape: f32[1,16], index: 5, kind: input, shape index: {}]   ;;  %s651_s6 = inlined_call_operand.vmem [shape: bf16[1,16], index: 6, kind: input, shape index: {}]   ;;  %s652_s7 = inlined_call_operand.<no memory space> [shape: f32[1,1], index: 7, kind: input, shape index: {}]   ;;  %s653_s8 = inlined_call_operand.vmem [shape: u32[1,16,32], index: 8, kind: input, shape index: {}]   ;;  %s654_s9 = inlined_call_operand.vmem [shape: u32[1,16,16], index: 9, kind: input, shape index: {}]   ;;  %s655_s10 = inlined_call_operand.hbm [shape: f32[1,1,16], index: 10, kind: output, shape index: {}]  }
   0x1   :  { %v15_v0 = vstv %s652_s7 }
   0x2   :  { %16 = vst [vmem:[#allocation2] sm:$0x1] %v15_v0 }
   0x3   :  { %17 = vsyncpa [#allocation4], 0 }
   0x4   :  { %18 = vsyncpa [#allocation7], 0 }
   0x5   :  { %19 = vsyncpa [#allocation5], 0  ;;  %s531_s15 = smov [#allocation3]  }
   0x6   :  { %s25_s16 = sshll.u32 %s531_s15, 4  ;;  %s26_s16 = int_to_ptr.vmem [resolvable:$true] %s25_s16 }
   0x7   :  { %s473_s17 = scalar_lea.vmem %s26_s16, 128  ;;  %p478_p1 = scmp.lt.s32.totalorder %s26_s16, %s26_s16 }
   0x8   :  { %p474_p0 = scmp.ne.s32.totalorder %s26_s16, %s473_s17  ;;  %p479_p2 = scmp.lt.s32.totalorder %s473_s17, %s473_s17 }
   0xa   :  { %p480_p3 = por %p479_p2, %p478_p1 }
   0xc   :  { %p481_p4 = pnand %p480_p3, %p474_p0 }
   0xe   :  { %484 = shalt.err (!%p481_p4)
}
   0xf   :  { %s532_s18 = smov 64   ;;  %s533_s19 = smov 4  }
  0x10   :  { %31 = dma.hbm_to_vmem [thread:$0]  %s645_s0, 128, %s26_s16, [#allocation4], %s532_s18, %s532_s18, %s533_s19  }
  0x11   :  { %s534_s7 = smov [#allocation6]  }
  0x12   :  { %s40_s22 = sshll.u32 %s534_s7, 4  ;;  %s41_s22 = int_to_ptr.vmem [resolvable:$true] %s40_s22 }
  0x13   :  { %s493_s23 = scalar_lea.vmem %s41_s22, 64  ;;  %p498_p6 = scmp.lt.s32.totalorder %s41_s22, %s41_s22 }
  0x14   :  { %p494_p5 = scmp.ne.s32.totalorder %s41_s22, %s493_s23  ;;  %p499_p7 = scmp.lt.s32.totalorder %s493_s23, %s493_s23 }
  0x16   :  { %p500_p8 = por %p499_p7, %p498_p6 }
  0x18   :  { %p501_p9 = pnand %p500_p8, %p494_p5 }
  0x1a   :  { %504 = shalt.err (!%p501_p9)
}
  0x1b   :  { %43 = dma.hbm_to_vmem [thread:$0]  %s647_s2, 64, %s41_s22, [#allocation7]  }
  0x1c   :  { %525 = dma.done.wait [#allocation4], 128  }
  0x1d   :  { %526 = vsyncadd [#allocation4], 4294967168 }
  0x1e   :  { %527 = dma.done.wait [#allocation7], 64  }
  0x1f   :  { %528 = vsyncadd [#allocation7], 4294967232  ;;  %v535_v1 = vmov 0.0   ;;  %vm536_vm0 = vmmov 0   ;;  %v461_v2 = vld [vmem:[%s646_s1] sm:$0xff]   ;;  %vm80_vm1 = vcmask 130048   ;;  %v330_v58 = vlaneseq }
  0x20   :  { %420 = vmatprep.subr.bf16.mxu0 %v535_v1  ;;  %422 = vmatprep.mubr.msk.bf16.mxu0 %vm536_vm0, %v535_v1  ;;  %v462_v3 = vld [vmem:[#allocation3] sm:$0xff]   ;;  %v126_v4 = vld [vmem:[#allocation6] sm:$0xf]  ;;  %vm138_vm2 = vcmask 1043456   ;;  %vm134_vm3 = vcmask 64512   ;;  %vm214_vm8 = vcmask 261120  }
  0x21   :  { %426 = vmatprep.subr.bf16.mxu1 %v535_v1  ;;  %428 = vmatprep.mubr.msk.bf16.mxu1 %vm536_vm0, %v535_v1  ;;  %v140_v5 = vsel %vm138_vm2, %v126_v4, 0  ;;  %v463_v11 = vld [vmem:[%s649_s4 + $0x8] sm:$0xff]   ;;  %v464_v12 = vld [vmem:[%s649_s4] sm:$0xff]   ;;  %v537_v37 = vmov 0   ;;  %v331_v59 = vshrl.u32 %v330_v58, 7  ;;  %vm380_vm13 = vcmask 122880  }
  0x22   :  { %421 = vmatpush3.bf16.msra.mxu0 %v461_v2  ;;  %427 = vmatpush3.bf16.msra.mxu1 %v140_v5  ;;  %v401_v13 = vld [vmem:[%s648_s3] ss:$0 sm:$0xff]  ;;  %v184_v22 = vld [vmem:[%s653_s8 + $0x8] sm:$0xff] }
  0x23   :  { %432 = vmatprep.subr.bf16.mxu0 %v535_v1  ;;  %440 = vmatprep.subr.bf16.mxu1 %v535_v1  ;;  %v183_v21 = vld [vmem:[%s653_s8] sm:$0xff]  ;;  %vm192_vm7 = vcmp.ge.u32.totalorder %v184_v22, 429496730  ;;  %v309_v48 = vld [vmem:[%s654_s9 + $0x8] sm:$0xff]  ;;  %v332_v60 = vsub.s32 0, %v331_v59 }
  0x24   :  { %vm191_vm6 = vcmp.ge.u32.totalorder %v183_v21, 429496730  ;;  %v324_v36 = vld [vmem:[#allocation2] sm:$0x1]  ;;  %460 = vset.pattern.permute.xlu0 %v537_v37  ;;  %vm317_vm12 = vcmp.ge.u32.totalorder %v309_v48, 429496730 }
  0x25   :  { %423 = vmatmul.mubr.msk.bf16.vlgmr.msra.gmra.mxu0 %vm80_vm1, %v462_v3  ;;  %327 = vperm.xlu0 %460, %v324_v36   ;;  %v406_v38 = vld [vmem:[%s650_s5] ss:$0 sm:$0xff] }
  0x26   :  { %436 = vmatprep.mubr.msk.bf16.mxu0 %vm536_vm0, %v535_v1  ;;  %433 = vmatpush3.bf16.msra.mxu0 %v463_v11  ;;  %v308_v47 = vld [vmem:[%s654_s9] sm:$0xff]  ;;  %s538_s9 = smov [#allocation8]  }
  0x27   :  { %434 = vmatprep.subr.bf16.mxu0 %v535_v1  ;;  %vm316_vm11 = vcmp.ge.u32.totalorder %v308_v47, 429496730  ;;  %v322_v57 = vld [vmem:[%s651_s6] sm:$0x1]  ;;  %s388_s19 = sshll.u32 %s538_s9, 4  ;;  %s389_s19 = int_to_ptr.vmem [resolvable:$true] %s388_s19 }
  0x28   :  { %s505_s20 = scalar_lea.vmem %s389_s19, 16  ;;  %s509_s21 = scalar_lea.vmem %s389_s19, 32 }
  0x29   :  { %p506_p10 = scmp.ne.s32.totalorder %s389_s19, %s505_s20  ;;  %p510_p11 = scmp.lt.s32.totalorder %s389_s19, %s389_s19 }
  0x2a   :  { %435 = vmatpush3.bf16.msra.mxu0 %v464_v12  ;;  %p511_p12 = scmp.lt.s32.totalorder %s509_s21, %s505_s20 }
  0x2b   :  { %446 = vmatprep.subr.bf16.mxu0 %v535_v1 }
  0x2c   :  { %p512_p13 = por %p511_p12, %p510_p11 }
  0x2e   :  { %p513_p0 = pnand %p512_p13, %p506_p10 }
  0xa0   :  { %v328_v61 = vpop.permute.xlu0 %327 }
  0xa1   :  { %v333_v62 = vrot.slane %v328_v61, %v332_v60 }
  0xe5   :  { %v118_v6 = vpop.f32.mrf.mxu0 }
  0xe7   :  { %v424_v7 = vpop.f32.mrf.mxu0 }
  0xe9   :  { %v121_v8 = vpop.f32.mrf.mxu0 }
  0xea   :  { %v125_v9 = vpack.c.bf16 %v121_v8, %v118_v6 }
  0xeb   :  { %v425_v10 = vpop.f32.mrf.mxu0 }
  0xec   :  { %429 = vmatmul.mubr.msk.bf16.vlgmr.msra.gmra.mxu1 %vm134_vm3, %v125_v9 }
  0xed   :  { %442 = vmatprep.mubr.msk.bf16.mxu1 %vm536_vm0, %v535_v1 }
 0x1ac   :  { %v176_v14 = vpop.f32.mrf.mxu1 }
 0x1ad   :  { %v177_v15 = vadd.f32 %v401_v13, %v176_v14 }
 0x1ae   :  { %v430_v16 = vpop.f32.mrf.mxu1 }
 0x1af   :  { %vm185_vm4 = vcmp.gt.f32.partialorder %v177_v15, 0.0  ;;  %v187_v17 = vmul.f32 0.01, %v177_v15 }
 0x1b0   :  { %v179_v18 = vpop.f32.mrf.mxu1 }
 0x1b1   :  { %v189_v19 = vsel %vm185_vm4, %v177_v15, %v187_v17  ;;  %v180_v20 = vadd.f32 %v401_v13, %v179_v18 }
 0x1b2   :  { %v431_v23 = vpop.f32.mrf.mxu1  ;;  %v193_v25 = vmul.f32 1.1111112, %v189_v19 }
 0x1b3   :  { %vm186_vm5 = vcmp.gt.f32.partialorder %v180_v20, 0.0  ;;  %v188_v24 = vmul.f32 0.01, %v180_v20 }
 0x1b4   :  { %v195_v28 = vsel %vm191_vm6, %v193_v25, 0.0 }
 0x1b5   :  { %v190_v26 = vsel %vm186_vm5, %v180_v20, %v188_v24 }
 0x1b6   :  { %v194_v27 = vmul.f32 1.1111112, %v190_v26 }
 0x1b8   :  { %v196_v29 = vsel %vm192_vm7, %v194_v27, 0.0 }
 0x1b9   :  { %v197_v30 = vpack.c.bf16 %v196_v29, %v195_v28 }
 0x1bb   :  { %437 = vmatmul.mubr.msk.bf16.vlgmr.msra.gmra.mxu0 %vm214_vm8, %v197_v30 }
 0x1bc   :  { %448 = vmatprep.mubr.msk.bf16.mxu0 %vm536_vm0, %v535_v1 }
 0x27b   :  { %v252_v31 = vpop.f32.mrf.mxu0 }
 0x27d   :  { %v438_v32 = vpop.f32.mrf.mxu0 }
 0x27f   :  { %v255_v33 = vpop.f32.mrf.mxu0 }
 0x280   :  { %v259_v34 = vpack.c.bf16 %v255_v33, %v252_v31 }
 0x281   :  { %v439_v35 = vpop.f32.mrf.mxu0 }
 0x282   :  { %441 = vmatpush3.bf16.msra.mxu1 %v259_v34 }
 0x285   :  { %443 = vmatmul.mubr.msk.bf16.vlgmr.msra.gmra.mxu1 %vm80_vm1, %v462_v3 }
 0x345   :  { %v301_v39 = vpop.f32.mrf.mxu1 }
 0x346   :  { %v302_v40 = vadd.f32 %v406_v38, %v301_v39 }
 0x347   :  { %v444_v41 = vpop.f32.mrf.mxu1 }
 0x348   :  { %vm310_vm9 = vcmp.gt.f32.partialorder %v302_v40, 0.0  ;;  %v312_v42 = vmul.f32 0.01, %v302_v40 }
 0x349   :  { %v304_v43 = vpop.f32.mrf.mxu1 }
 0x34a   :  { %v314_v44 = vsel %vm310_vm9, %v302_v40, %v312_v42  ;;  %v305_v45 = vadd.f32 %v406_v38, %v304_v43 }
 0x34b   :  { %v445_v46 = vpop.f32.mrf.mxu1  ;;  %v318_v50 = vmul.f32 1.1111112, %v314_v44 }
 0x34c   :  { %vm311_vm10 = vcmp.gt.f32.partialorder %v305_v45, 0.0  ;;  %v313_v49 = vmul.f32 0.01, %v305_v45 }
 0x34d   :  { %v320_v53 = vsel %vm316_vm11, %v318_v50, 0.0 }
 0x34e   :  { %v315_v51 = vsel %vm311_vm10, %v305_v45, %v313_v49 }
 0x34f   :  { %v319_v52 = vmul.f32 1.1111112, %v315_v51 }
 0x351   :  { %v321_v54 = vsel %vm317_vm12, %v319_v52, 0.0 }
 0x352   :  { %v323_v55 = vpack.c.bf16 %v321_v54, %v320_v53 }
 0x354   :  { %v338_v56 = vsel %vm80_vm1, %v323_v55, 0 }
 0x355   :  { %447 = vmatpush3.bf16.xpose.msra.mxu0 %v338_v56 }
 0x35c   :  { %449 = vmatmul.mubr.msk.bf16.vlgmr.msra.gmra.mxu0 %vm80_vm1, %v322_v57 }
 0x41c   :  { %v374_v63 = vpop.f32.mrf.mxu0 }
 0x41d   :  { %v375_v0 = vadd.f32 %v374_v63, %v333_v62 }
 0x41e   :  { %v450_v1 = vpop.f32.mrf.mxu0 }
 0x41f   :  { %381 = vst.msk [vmem:[#allocation8] sm:$0x1] %vm380_vm13, %v375_v0 }
 0x420   :  { %v377_v2 = vpop.f32.mrf.mxu0 }
 0x421   :  { %516 = shalt.err (!%p513_p0)
}
 0x422   :  { %391 = dma.vmem_to_hbm [thread:$0]  %s389_s19, 16, %s655_s10, [#allocation5]   ;;  %v451_v3 = vpop.f32.mrf.mxu0 }
 0x423   :  { %529 = dma.done.wait [#allocation5], 16  }
 0x424   :  { %530 = vsyncadd [#allocation5], 4294967280 }
 0x425   :  { %395 = vsyncpa [#allocation4], 1 }
 0x426   :  { %396 = vsyncpa [#allocation7], 1 }
 0x427   :  { %397 = vsyncpa [#allocation5], 1 }

</bundles_post_ra>
